<compile_context>
chip_gen: v5e
topology: v5e:2x2
jax: 0.10.0
libtpu: 0.0.40
codegen_flags: <defaults>
</compile_context>

<pallas_src>
import jax
import jax.numpy as jnp
from jax.experimental import pallas as pl
from jax.experimental.pallas import tpu as pltpu


_VMEM = pl.BlockSpec(memory_space=pltpu.MemorySpace.VMEM)
_SMEM = pl.BlockSpec(memory_space=pltpu.MemorySpace.SMEM)


# --------------------------- fused Pallas kernel ---------------------------

def _make_fused_kernel(batch, hp, h1, w1, c1, hp2, h2, w2, c2, n_cls):
    """Builds the single fused forward kernel (all shapes static)."""
    f32 = jnp.float32

    def kernel(x_ref,               # VMEM (batch*hp, wp*cin)  padded input, batch in sublanes
               labels_ref,          # VMEM (batch, 1) int32
               b1m_ref, b1b_ref,    # VMEM (3, wp*cin, w1*c1), (1, w1*c1)
               b2m_ref, b2b_ref,    # VMEM (3, w1*c1, w2*c2), (1, w2*c2)
               ws_ref, bs_ref,      # VMEM (w2*c2, f_sens) [pool fold + scale folded in], (1, f_sens)
               wh_ref, bh_ref,      # VMEM (f_sens, n_cls), (1, n_cls)
               out_ref,             # VMEM (batch, n_cls)
               reg_ref,             # SMEM (1, 1)
               a1_scr,              # VMEM (batch*h1, wp*cin)   conv1 row-gather buffer
               o1p_scr,             # VMEM (batch*hp2, w1*c1)   row-padded conv1 output
               a2_scr):             # VMEM (batch*h2, w1*c1)    conv2 row-gather buffer

        # ---- conv1 (stride 2, spatial pad applied wrapper-side) ----
        # One batched matmul per kh; row selection is a strided vld.
        o1 = jnp.zeros((batch * h1, w1 * c1), f32)
        for kh in range(3):
            for nn in range(batch):  # data movement only (cheap strided copy)
                a1_scr[pl.ds(nn * h1, h1), :] = \
                    x_ref[pl.ds(nn * hp + kh, h1, stride=2), :]
            o1 = o1 + jnp.dot(a1_scr[...], b1m_ref[kh],
                              preferred_element_type=f32)
        o1 = jnp.maximum(o1 + b1b_ref[...], 0.0)          # (batch*h1, w1*c1)

        # ---- scatter conv1 output into a row-padded scratch ----
        # (column zero-padding is folded into b2m; rows 0 and hp2-1 stay zero)
        o1p_scr[...] = jnp.zeros((batch * hp2, w1 * c1), f32)
        for nn in range(batch):
            o1p_scr[pl.ds(nn * hp2 + 1, h1), :] = o1[nn * h1:(nn + 1) * h1, :]

        # ---- conv2 (stride 2) ----
        o2 = jnp.zeros((batch * h2, w2 * c2), f32)
        for kh in range(3):
            for nn in range(batch):
                a2_scr[pl.ds(nn * h2, h2), :] = \
                    o1p_scr[pl.ds(nn * hp2 + kh, h2, stride=2), :]
            o2 = o2 + jnp.dot(a2_scr[...], b2m_ref[kh],
                              preferred_element_type=f32)
        o2 = jnp.maximum(o2 + b2b_ref[...], 0.0)           # (batch*h2, w2*c2)

        # ---- global average pool: constant 0/1 row-fold matmul over the batch ----
        row = jax.lax.broadcasted_iota(jnp.int32, (batch, batch * h2), 0)
        col = jax.lax.broadcasted_iota(jnp.int32, (batch, batch * h2), 1)
        pmat = jnp.logical_and(col >= row * h2, col < row * h2 + h2).astype(f32)
        pooled_w = jnp.dot(pmat, o2, preferred_element_type=f32)   # (batch, w2*c2)

        # ---- head_sens (lane fold of the pool + 1/(h2*w2) are inside ws_ref) ----
        feats = jnp.dot(pooled_w, ws_ref[...], preferred_element_type=f32)
        feats = jnp.maximum(feats + bs_ref[...], 0.0)       # (batch, f_sens)

        # ---- head: logits + reg_loss ----
        logits = jnp.dot(feats, wh_ref[...],
                         preferred_element_type=f32) + bh_ref[...]
        out_ref[...] = logits

        # reg_loss = mean_n logits[n, labels[n]]^2  (vectorized one-hot select)
        cls = jax.lax.broadcasted_iota(jnp.int32, (batch, n_cls), 1)
        onehot = (cls == labels_ref[...]).astype(f32)
        sel = jnp.sum(logits * onehot, axis=1, keepdims=True)       # (batch, 1)
        reg_ref[0, 0] = jnp.sum(sel * sel) * (1.0 / batch)

    return kernel


# ------------------------------ JAX wrapper --------------------------------

def _conv_to_matmul_weights(w, w_in, w_out, stride=2, offset=0):
    """Fold the kw (column) selection of a KxK stride-s conv into the weights.

    w: (K, K, Ci, Co) -> B: (K, w_in*Ci, w_out*Co) with
       B[kh, wcol*Ci+ci, j*Co+co] = w[kh, kw, ci, co]
         where kw = wcol + offset - stride*j (0 otherwise).
    `offset` = spatial padding amount when the input columns are UNPADDED
    (out-of-range kw simply drop out, implementing zero padding for free).
    """
    kk, _, ci, co = w.shape
    wpos = jnp.arange(w_in)[:, None, None]
    kpos = jnp.arange(kk)[None, :, None]
    jpos = jnp.arange(w_out)[None, None, :]
    mask = (wpos + offset == stride * jpos + kpos).astype(w.dtype)  # (w_in, K, w_out)
    b = jnp.einsum("wqj,pqio->pwijo", mask, w)           # (K, w_in, ci, w_out, co)
    return b.reshape(kk, w_in * ci, w_out * co)


def init_params(key):
    ks = jax.random.split(key, 4)
    c_in, c1, c2, f_sens, n_cls, k = 3, 8, 16, 32, 2, 3

    def init(kk, shape, fan_in):
        return jax.random.normal(kk, shape, jnp.float32) / jnp.sqrt(fan_in)

    return {
        "w_conv1": init(ks[0], (k, k, c_in, c1), k * k * c_in),
        "b_conv1": jnp.zeros((1, c1), jnp.float32),
        "w_conv2": init(ks[1], (k, k, c1, c2), k * k * c1),
        "b_conv2": jnp.zeros((1, c2), jnp.float32),
        "w_sens": init(ks[2], (c2, f_sens), c2),
        "b_sens": jnp.zeros((1, f_sens), jnp.float32),
        "w_head": init(ks[3], (f_sens, n_cls), f_sens),
        "b_head": jnp.zeros((1, n_cls), jnp.float32),
    }


def network_discriminator_forward(params, inputs_nchw, labels):
    """Matches Network_Discriminator.forward(inputs, labels) -> (outputs, reg_loss)."""
    x = jnp.transpose(inputs_nchw.astype(jnp.float32), (0, 2, 3, 1))  # NCHW->NHWC
    n, h, w, c_in = x.shape
    k, stride, pad = 3, 2, 1
    c1 = params["w_conv1"].shape[-1]
    c2 = params["w_conv2"].shape[-1]
    n_cls = params["w_head"].shape[-1]

    h1 = (h + 2 * pad - k) // stride + 1
    w1 = (w + 2 * pad - k) // stride + 1
    h2 = (h1 + 2 * pad - k) // stride + 1
    w2 = (w1 + 2 * pad - k) // stride + 1
    hp, wp = h + 2 * pad, w + 2 * pad
    hp2 = h1 + 2 * pad

    # ~1x-traffic input prep: pad spatially, flatten (W, Cin) into lanes and
    # the batch into sublanes (rows) so the kernel's conv matmuls are batched.
    xpad = jnp.pad(x, ((0, 0), (pad, pad), (pad, pad), (0, 0)))
    x2d = xpad.reshape(n * hp, wp * c_in)

    # Fold kw selection (and conv2's column zero-padding) into weight matrices.
    b1m = _conv_to_matmul_weights(params["w_conv1"], wp, w1, stride, offset=0)
    b2m = _conv_to_matmul_weights(params["w_conv2"], w1, w2, stride, offset=pad)
    b1t = jnp.tile(params["b_conv1"], (1, w1))            # (1, w1*c1)
    b2t = jnp.tile(params["b_conv2"], (1, w2))            # (1, w2*c2)

    # Fold the pool's lane fold (sum over w2 channel groups) and the 1/(h2*w2)
    # scale into the head_sens weight matrix (constant, tiny, wrapper-side).
    ws_eff = jnp.tile(params["w_sens"], (w2, 1)) * (1.0 / float(h2 * w2))

    labels_v = labels.astype(jnp.int32).reshape(n, 1)

    kernel = _make_fused_kernel(n, hp, h1, w1, c1, hp2, h2, w2, c2, n_cls)

    outputs, reg = pl.pallas_call(
        kernel,
        out_shape=(jax.ShapeDtypeStruct((n, n_cls), jnp.float32),
                   jax.ShapeDtypeStruct((1, 1), jnp.float32)),
        in_specs=[_VMEM] * 10,
        out_specs=(_VMEM, _SMEM),
        scratch_shapes=[
            pltpu.VMEM((n * h1, wp * c_in), jnp.float32),   # conv1 gather buffer
            pltpu.VMEM((n * hp2, w1 * c1), jnp.float32),    # row-padded conv1 output
            pltpu.VMEM((n * h2, w1 * c1), jnp.float32),     # conv2 gather buffer
        ],
    )(x2d, labels_v, b1m, b1t, b2m, b2t,
      ws_eff, params["b_sens"], params["w_head"], params["b_head"])

    return outputs, reg[0, 0]


network_discriminator_forward_jit = jax.jit(network_discriminator_forward)


if __name__ == "__main__":
    key = jax.random.PRNGKey(0)
    k_param, k_x, k_lab = jax.random.split(key, 3)

    params = init_params(k_param)
    x = jax.random.normal(k_x, (2, 3, 16, 16), jnp.float32)   # NCHW like PyTorch
    labels = jax.random.randint(k_lab, (2,), 0, 2, jnp.int32)

    outputs, reg_loss = network_discriminator_forward_jit(params, x, labels)
    jax.block_until_ready((outputs, reg_loss))

    assert outputs.shape == (2, 2) and reg_loss.shape == ()
    print("KERNEL_OK")
</pallas_src>

<mosaic_0001>
module attributes {stable_mosaic.version = 11 : i64} {
  func.func @kernel(%arg0: memref<36x54xf32, #tpu.memory_space<vmem>>, %arg1: memref<2x1xi32, #tpu.memory_space<vmem>>, %arg2: memref<3x54x64xf32, #tpu.memory_space<vmem>>, %arg3: memref<1x64xf32, #tpu.memory_space<vmem>>, %arg4: memref<3x64x64xf32, #tpu.memory_space<vmem>>, %arg5: memref<1x64xf32, #tpu.memory_space<vmem>>, %arg6: memref<64x32xf32, #tpu.memory_space<vmem>>, %arg7: memref<1x32xf32, #tpu.memory_space<vmem>>, %arg8: memref<32x2xf32, #tpu.memory_space<vmem>>, %arg9: memref<1x2xf32, #tpu.memory_space<vmem>>, %arg10: memref<2x2xf32, #tpu.memory_space<vmem>>, %arg11: memref<1x1xf32, #tpu.memory_space<smem>>, %arg12: memref<16x54xf32, #tpu.memory_space<vmem>>, %arg13: memref<20x64xf32, #tpu.memory_space<vmem>>, %arg14: memref<8x64xf32, #tpu.memory_space<vmem>>) attributes {dimension_semantics = [], scalar_prefetch = 0 : i64, scratch_operands = 3 : i64, tpu.core_type = #tpu.core_type<tc>} {
    %cst = arith.constant 0.000000e+00 : f32
    %0 = vector.broadcast %cst : f32 to vector<16x64xf32>
    %c0 = arith.constant 0 : index
    %c0_0 = arith.constant 0 : index
    %1 = tpu.strided_load %arg0[%c0, %c0_0] {strides = array<i32: 2, 1>} : memref<36x54xf32, #tpu.memory_space<vmem>>, vector<8x54xf32>
    %c0_1 = arith.constant 0 : index
    %c0_2 = arith.constant 0 : index
    %2 = vector.load %arg12[%c0_1, %c0_2] : memref<16x54xf32, #tpu.memory_space<vmem>>, vector<8x54xf32>
    tpu.vector_store %arg12[%c0_1, %c0_2], %1 {strides = array<i32>} : memref<16x54xf32, #tpu.memory_space<vmem>>, vector<8x54xf32>,
    %c18 = arith.constant 18 : index
    %c0_3 = arith.constant 0 : index
    %3 = tpu.strided_load %arg0[%c18, %c0_3] {strides = array<i32: 2, 1>} : memref<36x54xf32, #tpu.memory_space<vmem>>, vector<8x54xf32>
    %c8 = arith.constant 8 : index
    %c0_4 = arith.constant 0 : index
    %4 = vector.load %arg12[%c8, %c0_4] : memref<16x54xf32, #tpu.memory_space<vmem>>, vector<8x54xf32>
    tpu.vector_store %arg12[%c8, %c0_4], %3 {strides = array<i32>} : memref<16x54xf32, #tpu.memory_space<vmem>>, vector<8x54xf32>,
    %c0_5 = arith.constant 0 : index
    %c0_6 = arith.constant 0 : index
    %5 = vector.load %arg12[%c0_5, %c0_6] : memref<16x54xf32, #tpu.memory_space<vmem>>, vector<16x54xf32>
    %c0_7 = arith.constant 0 : index
    %c0_8 = arith.constant 0 : index
    %c0_9 = arith.constant 0 : index
    %6 = vector.load %arg2[%c0_7, %c0_8, %c0_9] : memref<3x54x64xf32, #tpu.memory_space<vmem>>, vector<1x54x64xf32>
    %7 = vector.shape_cast %6 : vector<1x54x64xf32> to vector<54x64xf32>
    %cst_10 = arith.constant dense<0.000000e+00> : vector<16x64xf32>
    %8 = tpu.matmul %5, %7, %cst_10 {dimension_numbers = #tpu.dot_dimension_numbers<[1], [0], [0], [1], [0, 0, 1, 1], [], []>} : vector<16x54xf32>, vector<54x64xf32>, vector<16x64xf32> -> vector<16x64xf32>
    %9 = arith.addf %0, %8 : vector<16x64xf32>
    %c1 = arith.constant 1 : index
    %c0_11 = arith.constant 0 : index
    %10 = tpu.strided_load %arg0[%c1, %c0_11] {strides = array<i32: 2, 1>} : memref<36x54xf32, #tpu.memory_space<vmem>>, vector<8x54xf32>
    %c0_12 = arith.constant 0 : index
    %c0_13 = arith.constant 0 : index
    %11 = vector.load %arg12[%c0_12, %c0_13] : memref<16x54xf32, #tpu.memory_space<vmem>>, vector<8x54xf32>
    tpu.vector_store %arg12[%c0_12, %c0_13], %10 {strides = array<i32>} : memref<16x54xf32, #tpu.memory_space<vmem>>, vector<8x54xf32>,
    %c19 = arith.constant 19 : index
    %c0_14 = arith.constant 0 : index
    %12 = tpu.strided_load %arg0[%c19, %c0_14] {strides = array<i32: 2, 1>} : memref<36x54xf32, #tpu.memory_space<vmem>>, vector<8x54xf32>
    %c8_15 = arith.constant 8 : index
    %c0_16 = arith.constant 0 : index
    %13 = vector.load %arg12[%c8_15, %c0_16] : memref<16x54xf32, #tpu.memory_space<vmem>>, vector<8x54xf32>
    tpu.vector_store %arg12[%c8_15, %c0_16], %12 {strides = array<i32>} : memref<16x54xf32, #tpu.memory_space<vmem>>, vector<8x54xf32>,
    %c0_17 = arith.constant 0 : index
    %c0_18 = arith.constant 0 : index
    %14 = vector.load %arg12[%c0_17, %c0_18] : memref<16x54xf32, #tpu.memory_space<vmem>>, vector<16x54xf32>
    %c1_19 = arith.constant 1 : index
    %c0_20 = arith.constant 0 : index
    %c0_21 = arith.constant 0 : index
    %15 = vector.load %arg2[%c1_19, %c0_20, %c0_21] : memref<3x54x64xf32, #tpu.memory_space<vmem>>, vector<1x54x64xf32>
    %16 = vector.shape_cast %15 : vector<1x54x64xf32> to vector<54x64xf32>
    %cst_22 = arith.constant dense<0.000000e+00> : vector<16x64xf32>
    %17 = tpu.matmul %14, %16, %cst_22 {dimension_numbers = #tpu.dot_dimension_numbers<[1], [0], [0], [1], [0, 0, 1, 1], [], []>} : vector<16x54xf32>, vector<54x64xf32>, vector<16x64xf32> -> vector<16x64xf32>
    %18 = arith.addf %9, %17 : vector<16x64xf32>
    %c2 = arith.constant 2 : index
    %c0_23 = arith.constant 0 : index
    %19 = tpu.strided_load %arg0[%c2, %c0_23] {strides = array<i32: 2, 1>} : memref<36x54xf32, #tpu.memory_space<vmem>>, vector<8x54xf32>
    %c0_24 = arith.constant 0 : index
    %c0_25 = arith.constant 0 : index
    %20 = vector.load %arg12[%c0_24, %c0_25] : memref<16x54xf32, #tpu.memory_space<vmem>>, vector<8x54xf32>
    tpu.vector_store %arg12[%c0_24, %c0_25], %19 {strides = array<i32>} : memref<16x54xf32, #tpu.memory_space<vmem>>, vector<8x54xf32>,
    %c20 = arith.constant 20 : index
    %c0_26 = arith.constant 0 : index
    %21 = tpu.strided_load %arg0[%c20, %c0_26] {strides = array<i32: 2, 1>} : memref<36x54xf32, #tpu.memory_space<vmem>>, vector<8x54xf32>
    %c8_27 = arith.constant 8 : index
    %c0_28 = arith.constant 0 : index
    %22 = vector.load %arg12[%c8_27, %c0_28] : memref<16x54xf32, #tpu.memory_space<vmem>>, vector<8x54xf32>
    tpu.vector_store %arg12[%c8_27, %c0_28], %21 {strides = array<i32>} : memref<16x54xf32, #tpu.memory_space<vmem>>, vector<8x54xf32>,
    %c0_29 = arith.constant 0 : index
    %c0_30 = arith.constant 0 : index
    %23 = vector.load %arg12[%c0_29, %c0_30] : memref<16x54xf32, #tpu.memory_space<vmem>>, vector<16x54xf32>
    %c2_31 = arith.constant 2 : index
    %c0_32 = arith.constant 0 : index
    %c0_33 = arith.constant 0 : index
    %24 = vector.load %arg2[%c2_31, %c0_32, %c0_33] : memref<3x54x64xf32, #tpu.memory_space<vmem>>, vector<1x54x64xf32>
    %25 = vector.shape_cast %24 : vector<1x54x64xf32> to vector<54x64xf32>
    %cst_34 = arith.constant dense<0.000000e+00> : vector<16x64xf32>
    %26 = tpu.matmul %23, %25, %cst_34 {dimension_numbers = #tpu.dot_dimension_numbers<[1], [0], [0], [1], [0, 0, 1, 1], [], []>} : vector<16x54xf32>, vector<54x64xf32>, vector<16x64xf32> -> vector<16x64xf32>
    %27 = arith.addf %18, %26 : vector<16x64xf32>
    %c0_35 = arith.constant 0 : index
    %c0_36 = arith.constant 0 : index
    %28 = vector.load %arg3[%c0_35, %c0_36] : memref<1x64xf32, #tpu.memory_space<vmem>>, vector<1x64xf32>
    %29 = vector.broadcast %28 : vector<1x64xf32> to vector<16x64xf32>
    %30 = arith.addf %27, %29 : vector<16x64xf32>
    %cst_37 = arith.constant 0.000000e+00 : f32
    %31 = vector.broadcast %cst_37 : f32 to vector<16x64xf32>
    %32 = arith.maximumf %30, %31 : vector<16x64xf32>
    %cst_38 = arith.constant 0.000000e+00 : f32
    %33 = vector.broadcast %cst_38 : f32 to vector<20x64xf32>
    %c0_39 = arith.constant 0 : index
    %c0_40 = arith.constant 0 : index
    %34 = vector.load %arg13[%c0_39, %c0_40] : memref<20x64xf32, #tpu.memory_space<vmem>>, vector<20x64xf32>
    tpu.vector_store %arg13[%c0_39, %c0_40], %33 {strides = array<i32>} : memref<20x64xf32, #tpu.memory_space<vmem>>, vector<20x64xf32>,
    %35 = vector.extract_strided_slice %32 {offsets = [0, 0], sizes = [8, 64], strides = [1, 1]} : vector<16x64xf32> to vector<8x64xf32>
    %c1_41 = arith.constant 1 : index
    %c0_42 = arith.constant 0 : index
    %36 = vector.load %arg13[%c1_41, %c0_42] : memref<20x64xf32, #tpu.memory_space<vmem>>, vector<8x64xf32>
    tpu.vector_store %arg13[%c1_41, %c0_42], %35 {strides = array<i32>} : memref<20x64xf32, #tpu.memory_space<vmem>>, vector<8x64xf32>,
    %37 = vector.extract_strided_slice %32 {offsets = [8, 0], sizes = [8, 64], strides = [1, 1]} : vector<16x64xf32> to vector<8x64xf32>
    %c11 = arith.constant 11 : index
    %c0_43 = arith.constant 0 : index
    %38 = vector.load %arg13[%c11, %c0_43] : memref<20x64xf32, #tpu.memory_space<vmem>>, vector<8x64xf32>
    tpu.vector_store %arg13[%c11, %c0_43], %37 {strides = array<i32>} : memref<20x64xf32, #tpu.memory_space<vmem>>, vector<8x64xf32>,
    %cst_44 = arith.constant 0.000000e+00 : f32
    %39 = vector.broadcast %cst_44 : f32 to vector<8x64xf32>
    %c0_45 = arith.constant 0 : index
    %c0_46 = arith.constant 0 : index
    %40 = tpu.strided_load %arg13[%c0_45, %c0_46] {strides = array<i32: 2, 1>} : memref<20x64xf32, #tpu.memory_space<vmem>>, vector<4x64xf32>
    %c0_47 = arith.constant 0 : index
    %c0_48 = arith.constant 0 : index
    %41 = vector.load %arg14[%c0_47, %c0_48] : memref<8x64xf32, #tpu.memory_space<vmem>>, vector<4x64xf32>
    tpu.vector_store %arg14[%c0_47, %c0_48], %40 {strides = array<i32>} : memref<8x64xf32, #tpu.memory_space<vmem>>, vector<4x64xf32>,
    %c10 = arith.constant 10 : index
    %c0_49 = arith.constant 0 : index
    %42 = tpu.strided_load %arg13[%c10, %c0_49] {strides = array<i32: 2, 1>} : memref<20x64xf32, #tpu.memory_space<vmem>>, vector<4x64xf32>
    %c4 = arith.constant 4 : index
    %c0_50 = arith.constant 0 : index
    %43 = vector.load %arg14[%c4, %c0_50] : memref<8x64xf32, #tpu.memory_space<vmem>>, vector<4x64xf32>
    tpu.vector_store %arg14[%c4, %c0_50], %42 {strides = array<i32>} : memref<8x64xf32, #tpu.memory_space<vmem>>, vector<4x64xf32>,
    %c0_51 = arith.constant 0 : index
    %c0_52 = arith.constant 0 : index
    %44 = vector.load %arg14[%c0_51, %c0_52] : memref<8x64xf32, #tpu.memory_space<vmem>>, vector<8x64xf32>
    %c0_53 = arith.constant 0 : index
    %c0_54 = arith.constant 0 : index
    %c0_55 = arith.constant 0 : index
    %45 = vector.load %arg4[%c0_53, %c0_54, %c0_55] : memref<3x64x64xf32, #tpu.memory_space<vmem>>, vector<1x64x64xf32>
    %46 = vector.shape_cast %45 : vector<1x64x64xf32> to vector<64x64xf32>
    %cst_56 = arith.constant dense<0.000000e+00> : vector<8x64xf32>
    %47 = tpu.matmul %44, %46, %cst_56 {dimension_numbers = #tpu.dot_dimension_numbers<[1], [0], [0], [1], [0, 0, 1, 1], [], []>} : vector<8x64xf32>, vector<64x64xf32>, vector<8x64xf32> -> vector<8x64xf32>
    %48 = arith.addf %39, %47 : vector<8x64xf32>
    %c1_57 = arith.constant 1 : index
    %c0_58 = arith.constant 0 : index
    %49 = tpu.strided_load %arg13[%c1_57, %c0_58] {strides = array<i32: 2, 1>} : memref<20x64xf32, #tpu.memory_space<vmem>>, vector<4x64xf32>
    %c0_59 = arith.constant 0 : index
    %c0_60 = arith.constant 0 : index
    %50 = vector.load %arg14[%c0_59, %c0_60] : memref<8x64xf32, #tpu.memory_space<vmem>>, vector<4x64xf32>
    tpu.vector_store %arg14[%c0_59, %c0_60], %49 {strides = array<i32>} : memref<8x64xf32, #tpu.memory_space<vmem>>, vector<4x64xf32>,
    %c11_61 = arith.constant 11 : index
    %c0_62 = arith.constant 0 : index
    %51 = tpu.strided_load %arg13[%c11_61, %c0_62] {strides = array<i32: 2, 1>} : memref<20x64xf32, #tpu.memory_space<vmem>>, vector<4x64xf32>
    %c4_63 = arith.constant 4 : index
    %c0_64 = arith.constant 0 : index
    %52 = vector.load %arg14[%c4_63, %c0_64] : memref<8x64xf32, #tpu.memory_space<vmem>>, vector<4x64xf32>
    tpu.vector_store %arg14[%c4_63, %c0_64], %51 {strides = array<i32>} : memref<8x64xf32, #tpu.memory_space<vmem>>, vector<4x64xf32>,
    %c0_65 = arith.constant 0 : index
    %c0_66 = arith.constant 0 : index
    %53 = vector.load %arg14[%c0_65, %c0_66] : memref<8x64xf32, #tpu.memory_space<vmem>>, vector<8x64xf32>
    %c1_67 = arith.constant 1 : index
    %c0_68 = arith.constant 0 : index
    %c0_69 = arith.constant 0 : index
    %54 = vector.load %arg4[%c1_67, %c0_68, %c0_69] : memref<3x64x64xf32, #tpu.memory_space<vmem>>, vector<1x64x64xf32>
    %55 = vector.shape_cast %54 : vector<1x64x64xf32> to vector<64x64xf32>
    %cst_70 = arith.constant dense<0.000000e+00> : vector<8x64xf32>
    %56 = tpu.matmul %53, %55, %cst_70 {dimension_numbers = #tpu.dot_dimension_numbers<[1], [0], [0], [1], [0, 0, 1, 1], [], []>} : vector<8x64xf32>, vector<64x64xf32>, vector<8x64xf32> -> vector<8x64xf32>
    %57 = arith.addf %48, %56 : vector<8x64xf32>
    %c2_71 = arith.constant 2 : index
    %c0_72 = arith.constant 0 : index
    %58 = tpu.strided_load %arg13[%c2_71, %c0_72] {strides = array<i32: 2, 1>} : memref<20x64xf32, #tpu.memory_space<vmem>>, vector<4x64xf32>
    %c0_73 = arith.constant 0 : index
    %c0_74 = arith.constant 0 : index
    %59 = vector.load %arg14[%c0_73, %c0_74] : memref<8x64xf32, #tpu.memory_space<vmem>>, vector<4x64xf32>
    tpu.vector_store %arg14[%c0_73, %c0_74], %58 {strides = array<i32>} : memref<8x64xf32, #tpu.memory_space<vmem>>, vector<4x64xf32>,
    %c12 = arith.constant 12 : index
    %c0_75 = arith.constant 0 : index
    %60 = tpu.strided_load %arg13[%c12, %c0_75] {strides = array<i32: 2, 1>} : memref<20x64xf32, #tpu.memory_space<vmem>>, vector<4x64xf32>
    %c4_76 = arith.constant 4 : index
    %c0_77 = arith.constant 0 : index
    %61 = vector.load %arg14[%c4_76, %c0_77] : memref<8x64xf32, #tpu.memory_space<vmem>>, vector<4x64xf32>
    tpu.vector_store %arg14[%c4_76, %c0_77], %60 {strides = array<i32>} : memref<8x64xf32, #tpu.memory_space<vmem>>, vector<4x64xf32>,
    %c0_78 = arith.constant 0 : index
    %c0_79 = arith.constant 0 : index
    %62 = vector.load %arg14[%c0_78, %c0_79] : memref<8x64xf32, #tpu.memory_space<vmem>>, vector<8x64xf32>
    %c2_80 = arith.constant 2 : index
    %c0_81 = arith.constant 0 : index
    %c0_82 = arith.constant 0 : index
    %63 = vector.load %arg4[%c2_80, %c0_81, %c0_82] : memref<3x64x64xf32, #tpu.memory_space<vmem>>, vector<1x64x64xf32>
    %64 = vector.shape_cast %63 : vector<1x64x64xf32> to vector<64x64xf32>
    %cst_83 = arith.constant dense<0.000000e+00> : vector<8x64xf32>
    %65 = tpu.matmul %62, %64, %cst_83 {dimension_numbers = #tpu.dot_dimension_numbers<[1], [0], [0], [1], [0, 0, 1, 1], [], []>} : vector<8x64xf32>, vector<64x64xf32>, vector<8x64xf32> -> vector<8x64xf32>
    %66 = arith.addf %57, %65 : vector<8x64xf32>
    %c0_84 = arith.constant 0 : index
    %c0_85 = arith.constant 0 : index
    %67 = vector.load %arg5[%c0_84, %c0_85] : memref<1x64xf32, #tpu.memory_space<vmem>>, vector<1x64xf32>
    %68 = vector.broadcast %67 : vector<1x64xf32> to vector<8x64xf32>
    %69 = arith.addf %66, %68 : vector<8x64xf32>
    %cst_86 = arith.constant 0.000000e+00 : f32
    %70 = vector.broadcast %cst_86 : f32 to vector<8x64xf32>
    %71 = arith.maximumf %69, %70 : vector<8x64xf32>
    %72 = tpu.iota {dimensions = array<i32: 0>} : vector<2x8xi32>
    %73 = tpu.iota {dimensions = array<i32: 1>} : vector<2x8xi32>
    %c4_i32 = arith.constant 4 : i32
    %74 = vector.broadcast %c4_i32 : i32 to vector<2x8xi32>
    %75 = arith.muli %72, %74 : vector<2x8xi32>
    %76 = arith.cmpi sge, %73, %75 : vector<2x8xi32>
    %c4_i32_87 = arith.constant 4 : i32
    %77 = vector.broadcast %c4_i32_87 : i32 to vector<2x8xi32>
    %78 = arith.muli %72, %77 : vector<2x8xi32>
    %c4_i32_88 = arith.constant 4 : i32
    %79 = vector.broadcast %c4_i32_88 : i32 to vector<2x8xi32>
    %80 = arith.addi %78, %79 : vector<2x8xi32>
    %81 = arith.cmpi slt, %73, %80 : vector<2x8xi32>
    %82 = arith.andi %76, %81 : vector<2x8xi1>
    %83 = arith.extui %82 : vector<2x8xi1> to vector<2x8xi32>
    %84 = arith.sitofp %83 : vector<2x8xi32> to vector<2x8xf32>
    %cst_89 = arith.constant dense<0.000000e+00> : vector<2x64xf32>
    %85 = tpu.matmul %84, %71, %cst_89 {dimension_numbers = #tpu.dot_dimension_numbers<[1], [0], [0], [1], [0, 0, 1, 1], [], []>} : vector<2x8xf32>, vector<8x64xf32>, vector<2x64xf32> -> vector<2x64xf32>
    %c0_90 = arith.constant 0 : index
    %c0_91 = arith.constant 0 : index
    %86 = vector.load %arg6[%c0_90, %c0_91] : memref<64x32xf32, #tpu.memory_space<vmem>>, vector<64x32xf32>
    %cst_92 = arith.constant dense<0.000000e+00> : vector<2x32xf32>
    %87 = tpu.matmul %85, %86, %cst_92 {dimension_numbers = #tpu.dot_dimension_numbers<[1], [0], [0], [1], [0, 0, 1, 1], [], []>} : vector<2x64xf32>, vector<64x32xf32>, vector<2x32xf32> -> vector<2x32xf32>
    %c0_93 = arith.constant 0 : index
    %c0_94 = arith.constant 0 : index
    %88 = vector.load %arg7[%c0_93, %c0_94] : memref<1x32xf32, #tpu.memory_space<vmem>>, vector<1x32xf32>
    %89 = vector.broadcast %88 : vector<1x32xf32> to vector<2x32xf32>
    %90 = arith.addf %87, %89 : vector<2x32xf32>
    %cst_95 = arith.constant 0.000000e+00 : f32
    %91 = vector.broadcast %cst_95 : f32 to vector<2x32xf32>
    %92 = arith.maximumf %90, %91 : vector<2x32xf32>
    %c0_96 = arith.constant 0 : index
    %c0_97 = arith.constant 0 : index
    %93 = vector.load %arg8[%c0_96, %c0_97] : memref<32x2xf32, #tpu.memory_space<vmem>>, vector<32x2xf32>
    %cst_98 = arith.constant dense<0.000000e+00> : vector<2x2xf32>
    %94 = tpu.matmul %92, %93, %cst_98 {dimension_numbers = #tpu.dot_dimension_numbers<[1], [0], [0], [1], [0, 0, 1, 1], [], []>} : vector<2x32xf32>, vector<32x2xf32>, vector<2x2xf32> -> vector<2x2xf32>
    %c0_99 = arith.constant 0 : index
    %c0_100 = arith.constant 0 : index
    %95 = vector.load %arg9[%c0_99, %c0_100] : memref<1x2xf32, #tpu.memory_space<vmem>>, vector<1x2xf32>
    %96 = vector.broadcast %95 : vector<1x2xf32> to vector<2x2xf32>
    %97 = arith.addf %94, %96 : vector<2x2xf32>
    %c0_101 = arith.constant 0 : index
    %c0_102 = arith.constant 0 : index
    %98 = vector.load %arg10[%c0_101, %c0_102] : memref<2x2xf32, #tpu.memory_space<vmem>>, vector<2x2xf32>
    tpu.vector_store %arg10[%c0_101, %c0_102], %97 {strides = array<i32>} : memref<2x2xf32, #tpu.memory_space<vmem>>, vector<2x2xf32>,
    %99 = tpu.iota {dimensions = array<i32: 1>} : vector<2x2xi32>
    %c0_103 = arith.constant 0 : index
    %c0_104 = arith.constant 0 : index
    %100 = vector.load %arg1[%c0_103, %c0_104] : memref<2x1xi32, #tpu.memory_space<vmem>>, vector<2x1xi32>
    %101 = vector.broadcast %100 : vector<2x1xi32> to vector<2x2xi32>
    %102 = arith.cmpi eq, %99, %101 : vector<2x2xi32>
    %103 = arith.extui %102 : vector<2x2xi1> to vector<2x2xi32>
    %104 = arith.sitofp %103 : vector<2x2xi32> to vector<2x2xf32>
    %105 = arith.mulf %97, %104 : vector<2x2xf32>
    %cst_105 = arith.constant dense<0.000000e+00> : vector<2xf32>
    %106 = vector.multi_reduction <add>, %105, %cst_105 [1] : vector<2x2xf32> to vector<2xf32>
    %107 = vector.shape_cast %106 : vector<2xf32> to vector<2x1xf32>
    %108 = arith.mulf %107, %107 : vector<2x1xf32>
    %109 = vector.shape_cast %108 : vector<2x1xf32> to vector<1x2x1xf32>
    %cst_106 = arith.constant dense<0.000000e+00> : vector<1xf32>
    %110 = vector.multi_reduction <add>, %109, %cst_106 [1, 2] : vector<1x2x1xf32> to vector<1xf32>
    %111 = vector.shape_cast %110 : vector<1xf32> to vector<1x1x1xf32>
    %112 = vector.extract %111[0, 0, 0] : f32 from vector<1x1x1xf32>
    %cst_107 = arith.constant 5.000000e-01 : f32
    %113 = arith.mulf %112, %cst_107 : f32
    %c0_108 = arith.constant 0 : index
    %c0_109 = arith.constant 0 : index
    %114 = memref.load %arg11[%c0_108, %c0_109] : memref<1x1xf32, #tpu.memory_space<smem>>
    memref.store %113, %arg11[%c0_108, %c0_109] : memref<1x1xf32, #tpu.memory_space<smem>>
    return
  }
}

</mosaic_0001>

<bundles_post_ra>
// kernel: network_discriminator_forward.1
= control target key start
LH: loop header
LB: loop body
LE: loop exit
PB: predicated region body
PF: predicated region fallthrough
CT: control target
= control target key end

     0   :  { %17 = vsyncpa [#allocation6], 0  ;;  %vm76_vm0 = vcmask 1045504   ;;  %vm40_vm1 = vcmask 441344   ;;  %s893_s0 = inlined_call_operand.vmem [shape: f32[36,54], index: 0, kind: input, shape index: {}]   ;;  %s894_s1 = inlined_call_operand.vmem [shape: s32[2,1], index: 1, kind: input, shape index: {}]   ;;  %s895_s2 = inlined_call_operand.vmem [shape: f32[3,54,64], index: 2, kind: input, shape index: {}]   ;;  %s896_s3 = inlined_call_operand.vmem [shape: f32[1,64], index: 3, kind: input, shape index: {}]   ;;  %s897_s4 = inlined_call_operand.vmem [shape: f32[3,64,64], index: 4, kind: input, shape index: {}]   ;;  %s898_s5 = inlined_call_operand.vmem [shape: f32[1,64], index: 5, kind: input, shape index: {}]   ;;  %s899_s6 = inlined_call_operand.vmem [shape: f32[64,32], index: 6, kind: input, shape index: {}]   ;;  %s900_s7 = inlined_call_operand.vmem [shape: f32[1,32], index: 7, kind: input, shape index: {}]   ;;  %s901_s8 = inlined_call_operand.vmem [shape: f32[32,2], index: 8, kind: input, shape index: {}]   ;;  %s902_s9 = inlined_call_operand.vmem [shape: f32[1,2], index: 9, kind: input, shape index: {}]   ;;  %s903_s10 = inlined_call_operand.hbm [shape: f32[2,2], index: 10, kind: output, shape index: {0}]   ;;  %s904_s11 = inlined_call_operand.hbm [shape: f32[1,1], index: 11, kind: output, shape index: {1}]  }
   0x1   :  { %v508_v0 = vld [vmem:[%s895_s2 + $0xa0] sm:$0x3f]  ;;  %v507_v1 = vld [vmem:[%s895_s2 + $0x98] sm:$0xff]  ;;  %v493_v2 = vld [vmem:[%s895_s2 + $0x68] sm:$0x3f] }
   0x2   :  { %509 = vmatpush.msk.msra.mxu2 %vm76_vm0, %v508_v0  ;;  %494 = vmatpush.msk.msra.mxu0 %vm76_vm0, %v493_v2  ;;  %v53_v3 = vld [vmem:[%s895_s2 + $0x30] sm:$0x3f]  ;;  %v492_v4 = vld [vmem:[%s895_s2 + $0x60] sm:$0xff]  ;;  %v52_v6 = vld [vmem:[%s895_s2 + $0x28] sm:$0xff] }
   0x3   :  { %497 = vmatpush.msk.msra.mxu1 %vm76_vm0, %v53_v3  ;;  %v506_v5 = vld [vmem:[%s895_s2 + $0x90] sm:$0xff]  ;;  %v491_v7 = vld [vmem:[%s895_s2 + $0x58] sm:$0xff]  ;;  %v51_v8 = vld [vmem:[%s895_s2 + $0x20] sm:$0xff] }
   0x4   :  { %170 = vmatpush.msra.mxu2 %v507_v1  ;;  %90 = vmatpush.msra.mxu0 %v492_v4  ;;  %v505_v9 = vld [vmem:[%s895_s2 + $0x88] sm:$0xff]  ;;  %v490_v10 = vld [vmem:[%s895_s2 + $0x50] sm:$0xff]  ;;  %v50_v11 = vld [vmem:[%s895_s2 + $0x18] sm:$0xff] }
   0x5   :  { %122 = vmatpush.msra.mxu1 %v52_v6  ;;  %v39_v12 = vld [vmem:[%s893_s0] ss:$2 sm:$0xff]  ;;  %v503_v15 = vld [vmem:[%s895_s2 + $0x78] sm:$0xff]  ;;  %v49_v16 = vld [vmem:[%s895_s2 + $0x10] sm:$0xff] }
   0x6   :  { %171 = vmatpush.msra.mxu2 %v506_v5  ;;  %91 = vmatpush.msra.mxu0 %v491_v7  ;;  %v504_v13 = vld [vmem:[%s895_s2 + $0x80] sm:$0xff]  ;;  %v489_v14 = vld [vmem:[%s895_s2 + $0x48] sm:$0xff]  ;;  %41 = vst.msk [vmem:[#allocation2] sm:$0xff] %vm40_vm1, %v39_v12  ;;  %v502_v17 = vld [vmem:[%s895_s2 + $0x70] sm:$0xff] }
   0x7   :  { %123 = vmatpush.msra.mxu1 %v51_v8  ;;  %v488_v18 = vld [vmem:[%s895_s2 + $0x40] sm:$0xff]  ;;  %v48_v19 = vld [vmem:[%s895_s2 + $0x8] sm:$0xff]  ;;  %v487_v21 = vld [vmem:[%s895_s2 + $0x38] sm:$0xff] }
   0x8   :  { %172 = vmatpush.msra.mxu2 %v505_v9  ;;  %92 = vmatpush.msra.mxu0 %v490_v10  ;;  %v484_v20 = vld [vmem:[%s893_s0 + $0x12] ss:$2 sm:$0xff] }
   0x9   :  { %124 = vmatpush.msra.mxu1 %v50_v11  ;;  %44 = vst.msk [vmem:[#allocation2 + $0x8] sm:$0xff] %vm40_vm1, %v484_v20 }
   0xa   :  { %173 = vmatpush.msra.mxu2 %v504_v13  ;;  %93 = vmatpush.msra.mxu0 %v489_v14 }
   0xb   :  { %125 = vmatpush.msra.mxu1 %v49_v16 }
   0xc   :  { %18 = vsyncpa [#allocation7], 0  ;;  %174 = vmatpush.msra.mxu2 %v503_v15  ;;  %v485_v22 = vld [vmem:[%s893_s0 + $0x1] ss:$2 sm:$0xff]  ;;  %94 = vmatpush.msra.mxu0 %v488_v18  ;;  %v500_v27 = vld [vmem:[%s893_s0 + $0x2] ss:$2 sm:$0xff] }
   0xd   :  { %v47_v23 = vld [vmem:[%s895_s2] sm:$0xff]  ;;  %126 = vmatpush.msra.mxu1 %v48_v19  ;;  %vm193_vm2 = vcmask 523264   ;;  %v587_v33 = vmov 0.0   ;;  %vm196_vm3 = vcmask 519168   ;;  %v213_v34 = vld [vmem:[%s897_s4 + $0x38] sm:$0xff]  ;;  %v212_v35 = vld [vmem:[%s897_s4 + $0x30] sm:$0xff] }
   0xe   :  { %175 = vmatpush.msra.mxu2 %v502_v17  ;;  %v45_v24 = vld [vmem:[#allocation2] sm:$0xff]  ;;  %95 = vmatpush.msra.mxu0 %v487_v21  ;;  %194 = vst.msk [vmem:[#allocation3] sm:$0xff] %vm193_vm2, %v587_v33  ;;  %v519_v36 = vld [vmem:[%s897_s4 + $0x78] sm:$0xff]  ;;  %v211_v37 = vld [vmem:[%s897_s4 + $0x28] sm:$0xff]  ;;  %vm333_vm7 = vcmask 64512   ;;  %vm401_vm8 = vcmask 261120  }
   0xf   :  { %56 = vst.msk [vmem:[#allocation2] sm:$0xff] %vm40_vm1, %v485_v22  ;;  %127 = vmatpush.msra.mxu1 %v47_v23  ;;  %v486_v25 = vld [vmem:[%s893_s0 + $0x13] ss:$2 sm:$0xff]  ;;  %v501_v29 = vld [vmem:[%s893_s0 + $0x14] ss:$2 sm:$0xff]  ;;  %241 = vmatpush.msra.mxu3 %v519_v36  ;;  %v517_v39 = vld [vmem:[%s897_s4 + $0x68] sm:$0xff]  ;;  %v322_v23 = vlaneseq }
  0x10   :  { %498 = vmatmul.msk.f32.vlgmr.msra.gmra.mxu1 %vm40_vm1, %v45_v24  ;;  %v46_v26 = vld [vmem:[#allocation2 + $0x8] sm:$0xff]  ;;  %195 = vst.msk [vmem:[#allocation3 + $0x8] sm:$0xff] %vm193_vm2, %v587_v33  ;;  %264 = vmatpush.msrb.mxu0 %v213_v34  ;;  %v518_v38 = vld [vmem:[%s897_s4 + $0x70] sm:$0xff]  ;;  %v210_v40 = vld [vmem:[%s897_s4 + $0x20] sm:$0xff]  ;;  %vm425_vm10 = vcmask 9216   ;;  %vm439_vm11 = vcmask 1024  }
  0x11   :  { %59 = vst.msk [vmem:[#allocation2 + $0x8] sm:$0xff] %vm40_vm1, %v486_v25  ;;  %242 = vmatpush.msra.mxu3 %v518_v38  ;;  %v516_v41 = vld [vmem:[%s897_s4 + $0x60] sm:$0xff]  ;;  %v209_v42 = vld [vmem:[%s897_s4 + $0x18] sm:$0xff]  ;;  %v208_v43 = vld [vmem:[%s897_s4 + $0x10] sm:$0xff]  ;;  %s469_s27 = sshll.u32 %s904_s11, 4  ;;  %s470_s27 = int_to_ptr.hbm [resolvable:$true] %s469_s27 }
  0x12   :  { %197 = vst.msk [vmem:[#allocation3 + $0x10] sm:$0xf] %vm196_vm3, %v587_v33  ;;  %265 = vmatpush.msrb.mxu0 %v212_v35  ;;  %v207_v46 = vld [vmem:[%s897_s4 + $0x8] sm:$0xff]  ;;  %v206_v47 = vld [vmem:[%s897_s4] sm:$0xff]  ;;  %v515_v51 = vld [vmem:[%s897_s4 + $0x58] sm:$0xff] }
  0x13   :  { %243 = vmatpush.msra.mxu3 %v517_v39  ;;  %v543_v49 = vld [vmem:[%s896_s3] ss:$0 sm:$0xff]  ;;  %v529_v52 = vld [vmem:[%s897_s4 + $0xb8] sm:$0xff]  ;;  %v514_v53 = vld [vmem:[%s897_s4 + $0x50] sm:$0xff] }
  0x14   :  { %266 = vmatpush.msrb.mxu0 %v211_v37  ;;  %303 = vmatpush.msrb.mxu1 %v529_v52  ;;  %v528_v55 = vld [vmem:[%s897_s4 + $0xb0] sm:$0xff]  ;;  %v513_v58 = vld [vmem:[%s897_s4 + $0x48] sm:$0xff]  ;;  %v512_v61 = vld [vmem:[%s897_s4 + $0x40] sm:$0xff] }
  0x15   :  { %244 = vmatpush.msra.mxu3 %v516_v41  ;;  %v527_v59 = vld [vmem:[%s897_s4 + $0xa8] sm:$0xff]  ;;  %v526_v62 = vld [vmem:[%s897_s4 + $0xa0] sm:$0xff]  ;;  %v525_v3 = vld [vmem:[%s897_s4 + $0x98] sm:$0xff] }
  0x16   :  { %v60_v28 = vld [vmem:[#allocation2] sm:$0xff]  ;;  %267 = vmatpush.msrb.mxu0 %v210_v40  ;;  %304 = vmatpush.msrb.mxu1 %v528_v55  ;;  %v524_v4 = vld [vmem:[%s897_s4 + $0x90] sm:$0xff]  ;;  %v523_v6 = vld [vmem:[%s897_s4 + $0x88] sm:$0xff] }
  0x17   :  { %137 = vst.msk [vmem:[#allocation2] sm:$0xff] %vm40_vm1, %v500_v27  ;;  %495 = vmatmul.msk.f32.vlgmr.msra.gmra.mxu0 %vm40_vm1, %v60_v28  ;;  %245 = vmatpush.msra.mxu3 %v515_v51  ;;  %v522_v8 = vld [vmem:[%s897_s4 + $0x80] sm:$0xff]  ;;  %v364_v18 = vld [vmem:[%s899_s6 + $0x38] sm:$0xff]  ;;  %v363_v19 = vld [vmem:[%s899_s6 + $0x30] sm:$0xff]  ;;  %v325_v28 = vand.u32 127, %v322_v23 }
  0x18   :  { %499 = vmatmul.msk.f32.gmra.mxu1 %vm40_vm1, %v46_v26  ;;  %v61_v30 = vld [vmem:[#allocation2 + $0x8] sm:$0xff]  ;;  %268 = vmatpush.msrb.mxu0 %v209_v42  ;;  %v361_v21 = vld [vmem:[%s899_s6 + $0x20] sm:$0xff]  ;;  %v360_v22 = vld [vmem:[%s899_s6 + $0x18] sm:$0xff]  ;;  %v323_v26 = vshrl.u32 %v322_v23, 7 }
  0x19   :  { %140 = vst.msk [vmem:[#allocation2 + $0x8] sm:$0xff] %vm40_vm1, %v501_v29  ;;  %246 = vmatpush.msra.mxu3 %v514_v53  ;;  %305 = vmatpush.msrb.mxu1 %v527_v59  ;;  %v362_v20 = vld [vmem:[%s899_s6 + $0x28] sm:$0xff]  ;;  %v359_v24 = vld [vmem:[%s899_s6 + $0x10] sm:$0xff]  ;;  %v544_v34 = vld [vmem:[%s898_s5] ss:$0 sm:$0xff] }
  0x1a   :  { %269 = vmatpush.msrb.mxu0 %v208_v43  ;;  %380 = vmatpush.msrb.mxu2 %v364_v18  ;;  %v358_v25 = vld [vmem:[%s899_s6 + $0x8] sm:$0xff]  ;;  %v326_v27 = vmul.u32 4, %v323_v26  ;;  %v357_v40 = vld [vmem:[%s899_s6] sm:$0xff]  ;;  %v396_v41 = vld [vmem:[%s901_s8 + $0x18] sm:$0xff] }
  0x1b   :  { %247 = vmatpush.msra.mxu3 %v513_v58  ;;  %306 = vmatpush.msrb.mxu1 %v526_v62  ;;  %v395_v43 = vld [vmem:[%s901_s8 + $0x10] sm:$0xff]  ;;  %v546_v53 = vld [vmem:[%s902_s9] ss:$0 sm:$0xff]  ;;  %s460_s9 = sshll.u32 %s903_s10, 4  ;;  %s590_s10 = smov [#allocation8]   ;;  %s461_s9 = int_to_ptr.hbm [resolvable:$true] %s460_s9 }
  0x1c   :  { %270 = vmatpush.msrb.mxu0 %v207_v46  ;;  %381 = vmatpush.msrb.mxu2 %v363_v19  ;;  %v328_v29 = vadd.s32 4, %v326_v27  ;;  %vm327_vm4 = vcmp.ge.s32.totalorder %v325_v28, %v326_v27  ;;  %v427_v46 = vld [vmem:[%s894_s1] sm:$0x3]  ;;  %s589_s1 = smov [#allocation5]  }
  0x1d   :  { %248 = vmatpush.msra.mxu3 %v512_v61  ;;  %307 = vmatpush.msrb.mxu1 %v525_v3 }
  0x1e   :  { %v141_v31 = vld [vmem:[#allocation2] sm:$0xff]  ;;  %271 = vmatpush.msrb.mxu0 %v206_v47  ;;  %382 = vmatpush.msrb.mxu2 %v362_v20  ;;  %vm329_vm5 = vcmp.lt.s32.totalorder %v325_v28, %v328_v29  ;;  %v588_v47 = vmov 0  }
  0x1f   :  { %510 = vmatmul.msk.f32.vlgmr.msra.gmra.mxu2 %vm40_vm1, %v141_v31  ;;  %496 = vmatmul.msk.f32.gmra.mxu0 %vm40_vm1, %v61_v30  ;;  %vm330_vm6 = vmand %vm327_vm4, %vm329_vm5 }
  0x20   :  { %v142_v32 = vld [vmem:[#allocation2 + $0x8] sm:$0xff]  ;;  %308 = vmatpush.msrb.mxu1 %v524_v4  ;;  %383 = vmatpush.msrb.mxu2 %v361_v21  ;;  %v531_v39 = vsel %vm330_vm6, 1.0, %v587_v33 }
  0x21   :  { %542 = vset.pattern.permute.xlu0 %v588_v47 }
  0x22   :  { %309 = vmatpush.msrb.mxu1 %v523_v6  ;;  %384 = vmatpush.msrb.mxu2 %v360_v22 }
  0x23   :  { %429 = vperm.xlu0 %542, %v427_v46  }
  0x24   :  { %310 = vmatpush.msrb.mxu1 %v522_v8  ;;  %385 = vmatpush.msrb.mxu2 %v359_v24 }
  0x26   :  { %386 = vmatpush.msrb.mxu2 %v358_v25 }
  0x27   :  { %511 = vmatmul.msk.f32.gmra.mxu2 %vm40_vm1, %v142_v32 }
  0x28   :  { %387 = vmatpush.msrb.mxu2 %v357_v40 }
  0x8d   :  { %v129_v45 = vpop.f32.mrf.mxu1 }
  0x94   :  { %v97_v44 = vpop.f32.mrf.mxu0 }
  0x95   :  { %v130_v48 = vadd.f32 %v129_v45, %v97_v44  ;;  %v132_v57 = vpop.f32.mrf.mxu1  ;;  %v394_v44 = vld [vmem:[%s901_s8 + $0x8] sm:$0xff]  ;;  %v393_v45 = vld [vmem:[%s901_s8] sm:$0xff]  ;;  %v430_v52 = vpop.permute.xlu0 %429 }
  0x96   :  { %vm431_vm9 = vcmp.eq.s32.totalorder %v325_v28, %v430_v52 }
  0x9c   :  { %v100_v56 = vpop.f32.mrf.mxu0 }
  0x9d   :  { %v133_v0 = vadd.f32 %v132_v57, %v100_v56 }
  0xa2   :  { %v177_v50 = vpop.f32.mrf.mxu2 }
  0xa3   :  { %v183_v54 = vadd.f32 %v177_v50, %v130_v48  ;;  %v545_v48 = vld [vmem:[%s900_s7] ss:$0 sm:$0xff]  ;;  %s458_s7 = sshll.u32 %s589_s1, 4  ;;  %s459_s7 = int_to_ptr.vmem [resolvable:$true] %s458_s7 }
  0xa5   :  { %v189_v60 = vadd.f32 %v543_v49, %v183_v54  ;;  %v535_v54 = vsel %vm431_vm9, 1.0, %v587_v33 }
  0xa7   :  { %v191_v63 = vmax.f32 %v189_v60, 0.0 }
  0xa9   :  { %198 = vst.msk [vmem:[#allocation3 + $0x1] sm:$0xff] %vm193_vm2, %v191_v63 }
  0xaa   :  { %v180_v1 = vpop.f32.mrf.mxu2 }
  0xab   :  { %v184_v2 = vadd.f32 %v180_v1, %v133_v0 }
  0xad   :  { %v190_v5 = vadd.f32 %v543_v49, %v184_v2 }
  0xaf   :  { %v192_v7 = vmax.f32 %v190_v5, 0.0 }
  0xb0   :  { %v200_v9 = vld [vmem:[#allocation3] ss:$2 sm:$0xf]  ;;  %v215_v12 = vld [vmem:[#allocation3 + $0x1] ss:$2 sm:$0xf] }
  0xb1   :  { %199 = vst.msk [vmem:[#allocation3 + $0xb] sm:$0xff] %vm193_vm2, %v192_v7  ;;  %v277_v15 = vld [vmem:[#allocation3 + $0x2] ss:$2 sm:$0xf] }
  0xb2   :  { %201 = vst.msk [vmem:[#allocation4] sm:$0xf] %vm196_vm3, %v200_v9 }
  0xb8   :  { %v203_v10 = vld [vmem:[#allocation3 + $0xa] ss:$2 sm:$0xf]  ;;  %v218_v13 = vld [vmem:[#allocation3 + $0xb] ss:$2 sm:$0xf] }
  0xb9   :  { %204 = vst.msk [vmem:[#allocation4 + $0x4] sm:$0xf] %vm196_vm3, %v203_v10  ;;  %v280_v16 = vld [vmem:[#allocation3 + $0xc] ss:$2 sm:$0xf] }
  0xc0   :  { %v205_v11 = vld [vmem:[#allocation4] sm:$0xff] }
  0xc1   :  { %216 = vst.msk [vmem:[#allocation4] sm:$0xf] %vm196_vm3, %v215_v12  ;;  %521 = vmatmul.msk.f32.vlgmr.msrb.gmra.mxu0 %vm193_vm2, %v205_v11 }
  0xc2   :  { %219 = vst.msk [vmem:[#allocation4 + $0x4] sm:$0xf] %vm196_vm3, %v218_v13 }
  0xc9   :  { %v220_v14 = vld [vmem:[#allocation4] sm:$0xff] }
  0xca   :  { %520 = vmatmul.msk.f32.vlgmr.msra.gmra.mxu3 %vm193_vm2, %v220_v14  ;;  %278 = vst.msk [vmem:[#allocation4] sm:$0xf] %vm196_vm3, %v277_v15 }
  0xcb   :  { %281 = vst.msk [vmem:[#allocation4 + $0x4] sm:$0xf] %vm196_vm3, %v280_v16 }
  0xd2   :  { %v282_v17 = vld [vmem:[#allocation4] sm:$0xff] }
  0xd3   :  { %530 = vmatmul.msk.f32.vlgmr.msrb.gmra.mxu1 %vm193_vm2, %v282_v17 }
 0x13e   :  { %v273_v30 = vpop.f32.mrf.mxu0 }
 0x14d   :  { %v250_v31 = vpop.f32.mrf.mxu3 }
 0x14e   :  { %v274_v32 = vadd.f32 %v273_v30, %v250_v31 }
 0x150   :  { %v312_v35 = vpop.f32.mrf.mxu1 }
 0x151   :  { %v315_v36 = vadd.f32 %v312_v35, %v274_v32 }
 0x153   :  { %v320_v37 = vadd.f32 %v544_v34, %v315_v36 }
 0x155   :  { %v321_v38 = vmax.f32 %v320_v37, 0.0 }
 0x157   :  { %352 = vmatpush.msrb.mxu3 %v321_v38 }
 0x158   :  { %532 = vmatmul.msk.f32.vlgmr.msrb.gmra.mxu3 %vm333_vm7, %v531_v39 }
 0x159   :  { %417 = vmatpush.msra.mxu3 %v396_v41 }
 0x15b   :  { %418 = vmatpush.msra.mxu3 %v395_v43 }
 0x15d   :  { %419 = vmatpush.msra.mxu3 %v394_v44 }
 0x15f   :  { %420 = vmatpush.msra.mxu3 %v393_v45 }
 0x1db   :  { %v354_v42 = vpop.f32.mrf.mxu3 }
 0x1dc   :  { %533 = vmatmul.msk.f32.vlgmr.msrb.gmra.mxu2 %vm193_vm2, %v354_v42 }
 0x25f   :  { %v389_v49 = vpop.f32.mrf.mxu2 }
 0x260   :  { %v390_v50 = vadd.f32 %v545_v48, %v389_v49 }
 0x262   :  { %v392_v51 = vmax.f32 %v390_v50, 0.0 }
 0x264   :  { %534 = vmatmul.msk.f32.vlgmr.msra.gmra.mxu3 %vm401_vm8, %v392_v51 }
 0x2e7   :  { %v422_v55 = vpop.f32.mrf.mxu3 }
 0x2e8   :  { %v423_v56 = vadd.f32 %v546_v53, %v422_v55 }
 0x2ea   :  { %v434_v57 = vmul.f32 %v535_v54, %v423_v56  ;;  %426 = vst.msk [vmem:[#allocation5] sm:$0x3] %vm425_vm10, %v423_v56 }
 0x2eb   :  { %463 = dma.vmem_to_hbm [thread:$0]  %s459_s7, 32, %s461_s9, [#allocation6]  }
 0x2ec   :  { %v435_v58 = vsel %vm425_vm10, %v434_v57, 0.0 }
 0x2ed   :  { %436 = vadd.xlane.f32.xlu0 %v435_v58 }
 0x360   :  { %v437_v59 = vpop.xlane.xlu0 %436 }
 0x361   :  { %v438_v60 = vmul.f32 %v437_v59, %v437_v59 }
 0x363   :  { %v440_v61 = vsel %vm439_vm11, %v438_v60, 0.0 }
 0x364   :  { %441 = vadd.xlane.f32.xlu1 %v440_v61 }
 0x3d7   :  { %v442_v33 = vpop.xlane.xlu1 %441 }
 0x3d8   :  { %v443_v62 = vrot.slane %v442_v33, 4 }
 0x3da   :  { %v444_v63 = vadd.f32 %v443_v62, %v442_v33 }
 0x3dc   :  { %v445_v0 = vrot.slane %v444_v63, 2 }
 0x3de   :  { %v446_v1 = vadd.f32 %v445_v0, %v444_v63 }
 0x3e0   :  { %v447_v2 = vrot.slane %v446_v1, 1 }
 0x3e2   :  { %v448_v3 = vadd.f32 %v447_v2, %v446_v1 }
 0x3e4   :  { %536 = vpush %v448_v3 }
 0x415   :  { %s537_s28 = spop %536 }
 0x416   :  { %s450_s29 = smul.f32 0.5, %s537_s28 }
 0x418   :  { %452 = sst [smem:[#allocation8]] %s450_s29 }
 0x419   :  { %472 = dma.smem_to_hbm %s590_s10, 16, %s470_s27, [#allocation7]  }
 0x41a   :  { %583 = dma.done.wait [#allocation6], 32  }
 0x41b   :  { %584 = vsyncadd [#allocation6], 4294967264 }
 0x41c   :  { %585 = dma.done.wait [#allocation7], 16  }
 0x41d   :  { %586 = vsyncadd [#allocation7], 4294967280 }
 0x41e   :  { %481 = sfence }
 0x41f   :  { %482 = vsyncpa [#allocation6], 1 }
 0x420   :  { %483 = vsyncpa [#allocation7], 1 }

</bundles_post_ra>
